<compile_context>
chip_gen: v5e
topology: v5e:2x2
jax: 0.10.0
libtpu: 0.0.40
codegen_flags: <defaults>
</compile_context>

<pallas_src>
import functools

import jax
import jax.numpy as jnp
import numpy as np
from jax import lax
from jax.experimental import pallas as pl
from jax.experimental.pallas import tpu as pltpu


def _dice_partial_kernel(pred_ref, tgt_ref, inter_out, pp_out, tp_out,
                         inter_acc, pp_acc, tp_acc,
                         *, C, tS, S, p, need_row_mask):
    o = pl.program_id(1)
    i = pl.program_id(2)
    n_inner = pl.num_programs(2)

    @pl.when(i == 0)
    def _():
        inter_acc[...] = jnp.zeros_like(inter_acc)
        pp_acc[...] = jnp.zeros_like(pp_acc)
        tp_acc[...] = jnp.zeros_like(tp_acc)

    def powp(x):
        if p == 2:                       # keep the power on the VPU
            return x * x
        return x ** p

    # Unrolled channel loop: every op below is a dense (tS, 128) VPU op; the
    # channel reduction never goes through the XLU sublane path and no
    # (C, tS, 128) temporary is materialized.
    p0 = pred_ref[0, 0].astype(jnp.float32)          # (tS, 128)
    t0 = tgt_ref[0, 0].astype(jnp.float32)
    inter_p = p0 * t0
    pp_p = powp(p0)
    tp_p = powp(t0)
    t_max = t0
    for c in range(1, C):
        pc = pred_ref[0, c].astype(jnp.float32)
        tc = tgt_ref[0, c].astype(jnp.float32)
        inter_p = inter_p + pc * tc
        pp_p = pp_p + powp(pc)
        tp_p = tp_p + powp(tc)
        t_max = jnp.maximum(t_max, tc)

    # valid pixel <=> argmax_c target != 0 <=> exists c>0 with tgt[c] > tgt[0]
    # <=> max_c tgt > tgt[0] (strict compare matches first-occurrence argmax;
    # zero-padded lanes give an all-zero target => invalid).
    valid = t_max > t0                               # (tS, 128) bool

    if need_row_mask:
        # Last spatial block of a sample may hang past the S real rows; mask
        # those rows out of all three partial sums (jnp.where select is
        # NaN-safe on whatever the partial edge block holds there).
        start = (o * n_inner + i) * tS
        row = lax.broadcasted_iota(jnp.int32, (tS, 128), 0)
        valid = jnp.logical_and(valid, (start + row) < S)

    inter_acc[...] += jnp.where(valid, inter_p, 0.0)
    pp_acc[...] += jnp.where(valid, pp_p, 0.0)
    tp_acc[...] += jnp.where(valid, tp_p, 0.0)

    @pl.when(i == n_inner - 1)
    def _():
        # One cross-lane/sublane reduce per (sample, outer split); lane-dense
        # (8, 128) output blocks (unmasked full-vreg stores).
        inter_out[...] = jnp.full(inter_out.shape, jnp.sum(inter_acc[...]),
                                  jnp.float32)
        pp_out[...] = jnp.full(pp_out.shape, jnp.sum(pp_acc[...]), jnp.float32)
        tp_out[...] = jnp.full(tp_out.shape, jnp.sum(tp_acc[...]), jnp.float32)


def _round_up(x, m):
    return (x + m - 1) // m * m


def _vmem_capacity_bytes():
    try:
        return int(pltpu.get_tpu_info().vmem_capacity_bytes)
    except Exception:
        return 64 * 1024 * 1024          # conservative (v7x-sized) fallback


def dice_loss(predicts, targets, *, smooth=1.0, p=2, tile_rows=None):
    """predicts/targets: (N, C, H, W) NCHW like the PyTorch module (mean reduction)."""
    N, C, H, W = predicts.shape
    HW = H * W

    # Keep the HBM dtype (no wrapper f32 upcast) -- kernel casts internally.
    pred = predicts.reshape(N, C, HW)
    tgt = targets.reshape(N, C, HW)

    # Lane-dense 4D view (N, C, S, 128). For 128-aligned spatial sizes this is
    # a pure metadata reshape (no copy). Otherwise pad only to the next lane
    # multiple (zero targets => invalid pixel => contributes 0).
    # TODO(synk): a fully pad-free tail for HW % 128 != 0 needs a second,
    # lane-masked 3D-layout kernel variant; the pad costs one extra HBM pass
    # only in that case.
    hw_pad = _round_up(HW, 128)
    if hw_pad != HW:
        pad = hw_pad - HW
        pred = jnp.pad(pred, ((0, 0), (0, 0), (0, pad)))
        tgt = jnp.pad(tgt, ((0, 0), (0, 0), (0, pad)))
    S = hw_pad // 128
    pred = pred.reshape(N, C, S, 128)
    tgt = tgt.reshape(N, C, S, 128)

    itemsize = max(jnp.dtype(pred.dtype).itemsize, jnp.dtype(tgt.dtype).itemsize)

    # Per-generation tile sizing: a few MiB of input per block so the pair of
    # double-buffered inputs stays well inside scoped VMEM (v5e/v6e: 128 MiB
    # physical, v7x: 64 MiB). The 4D layout makes this byte count exact (no
    # sublane padding of C).
    vmem_cap = _vmem_capacity_bytes()
    big_vmem = vmem_cap > 100 * 1024 * 1024
    block_bytes = (4 if big_vmem else 2) * 1024 * 1024       # per input block
    tS = block_bytes // (C * 128 * itemsize)
    if tile_rows is not None:
        tS = int(tile_rows)
    if tS >= S:
        tS = S                       # one spatial block (block dim == full dim)
    else:
        tS = max(8, (tS // 8) * 8)   # sublane-aligned tile
    n_blocks = (S + tS - 1) // tS
    need_row_mask = (S % tS) != 0

    # 2-way outer spatial split (only when it divides evenly) so a small batch
    # can still feed both v7x TensorCores; harmless loop split on v5e/v6e.
    n_outer = 2 if (n_blocks >= 2 and n_blocks % 2 == 0) else 1
    n_inner = n_blocks // n_outer

    kernel = functools.partial(_dice_partial_kernel, C=C, tS=tS, S=S, p=p,
                               need_row_mask=need_row_mask)

    in_map = lambda b, o, i: (b, 0, o * n_inner + i, 0)
    out_map = lambda b, o, i: (b, o, 0, 0)
    part_shape = jax.ShapeDtypeStruct((N, n_outer, 8, 128), jnp.float32)

    inter, pp, tp = pl.pallas_call(
        kernel,
        out_shape=(part_shape, part_shape, part_shape),
        grid_spec=pltpu.PrefetchScalarGridSpec(
            num_scalar_prefetch=0,
            grid=(N, n_outer, n_inner),             # reduction (spatial) axis last
            in_specs=[
                pl.BlockSpec((1, C, tS, 128), in_map),
                pl.BlockSpec((1, C, tS, 128), in_map),
            ],
            out_specs=[
                pl.BlockSpec((1, 1, 8, 128), out_map),
                pl.BlockSpec((1, 1, 8, 128), out_map),
                pl.BlockSpec((1, 1, 8, 128), out_map),
            ],
            scratch_shapes=[
                pltpu.VMEM((tS, 128), jnp.float32),   # sum_c pred*tgt partials
                pltpu.VMEM((tS, 128), jnp.float32),   # sum_c pred**p partials
                pltpu.VMEM((tS, 128), jnp.float32),   # sum_c tgt**p  partials
            ],
        ),
        compiler_params=pltpu.CompilerParams(
            dimension_semantics=("parallel", "parallel", "arbitrary"),
            vmem_limit_bytes=min(vmem_cap * 3 // 4, 96 * 1024 * 1024),
        ),
    )(pred, tgt)

    inter_b = jnp.sum(inter[:, :, 0, 0], axis=1)     # (N,)
    pp_b = jnp.sum(pp[:, :, 0, 0], axis=1)
    tp_b = jnp.sum(tp[:, :, 0, 0], axis=1)
    loss = 1.0 - 2.0 * (inter_b + smooth) / (pp_b + tp_b + smooth)
    return jnp.mean(loss)                            # reduction='mean'


def dice_loss_ref(predicts, targets, *, smooth=1.0, p=2):
    """Pure-JAX reference mirroring the PyTorch forward (reduction='mean')."""
    N, C, H, W = predicts.shape
    pred = predicts.reshape(N, C, H * W).astype(jnp.float32)
    tgt = targets.reshape(N, C, H * W).astype(jnp.float32)
    mask = (jnp.argmax(tgt, axis=1) != 0).astype(jnp.float32)[:, None, :]
    inter = jnp.sum(mask * pred * tgt, axis=(1, 2))
    pred_p = jnp.sum(mask * pred ** p, axis=(1, 2))
    tgt_p = jnp.sum(mask * tgt ** p, axis=(1, 2))
    loss = 1.0 - 2.0 * (inter + smooth) / (pred_p + tgt_p + smooth)
    return jnp.mean(loss)


def _make_inputs(key, N, C, H, W):
    k1, k2 = jax.random.split(key)
    logits = jax.random.normal(k1, (N, C, H, W), dtype=jnp.float32)
    predicts = jax.nn.softmax(logits, axis=1)                        # (N,C,H,W)
    labels = jax.random.randint(k2, (N, H, W), 0, C)
    targets = jax.nn.one_hot(labels, C, axis=1, dtype=jnp.float32)   # (N,C,H,W)
    return predicts, targets


if __name__ == "__main__":
    key = jax.random.PRNGKey(0)
    keys = jax.random.split(key, 4)

    cases = [
        # ((N, C, H, W), tile_rows override)
        ((2, 4, 16, 16), None),   # primary shape: single dense block per sample
        ((2, 4, 13, 13), None),   # HW % 128 != 0 -> lane-pad path
        ((1, 4, 40, 40), 8),      # partial last block + 2-way outer (v7x) split
        ((2, 4, 48, 48), 8),      # odd block count -> multi-step accumulation
    ]
    for k, ((N, C, H, W), tile_rows) in zip(keys, cases):
        predicts, targets = _make_inputs(k, N, C, H, W)
        out = jax.block_until_ready(
            dice_loss(predicts, targets, smooth=1.0, p=2, tile_rows=tile_rows))
        ref = dice_loss_ref(predicts, targets, smooth=1.0, p=2)
        np.testing.assert_allclose(np.asarray(out), np.asarray(ref),
                                   rtol=1e-5, atol=1e-5)

    print("KERNEL_OK")
</pallas_src>

<mosaic_0001>
module attributes {stable_mosaic.version = 11 : i64} {
  func.func @_dice_partial_kernel(%arg0: i32, %arg1: i32, %arg2: i32, %arg3: memref<1x4x2x128xf32, #tpu.memory_space<vmem>>, %arg4: memref<1x4x2x128xf32, #tpu.memory_space<vmem>>, %arg5: memref<1x1x8x128xf32, #tpu.memory_space<vmem>>, %arg6: memref<1x1x8x128xf32, #tpu.memory_space<vmem>>, %arg7: memref<1x1x8x128xf32, #tpu.memory_space<vmem>>, %arg8: memref<2x128xf32, #tpu.memory_space<vmem>>, %arg9: memref<2x128xf32, #tpu.memory_space<vmem>>, %arg10: memref<2x128xf32, #tpu.memory_space<vmem>>) attributes {dimension_semantics = [#tpu.dimension_semantics<parallel>, #tpu.dimension_semantics<parallel>, #tpu.dimension_semantics<arbitrary>], iteration_bounds = array<i64: 2, 1, 1>, scalar_prefetch = 0 : i64, scratch_operands = 3 : i64, tpu.core_type = #tpu.core_type<tc>, window_params = [{transform_indices = @transform_0, window_bounds = array<i64: 1, 4, 2, 128>}, {transform_indices = @transform_1, window_bounds = array<i64: 1, 4, 2, 128>}, {transform_indices = @transform_2, window_bounds = array<i64: 1, 1, 8, 128>}, {transform_indices = @transform_3, window_bounds = array<i64: 1, 1, 8, 128>}, {transform_indices = @transform_4, window_bounds = array<i64: 1, 1, 8, 128>}]} {
    %c0_i32 = arith.constant 0 : i32
    %0 = arith.cmpi eq, %arg2, %c0_i32 : i32
    %1 = arith.extui %0 : i1 to i32
    %c0_i32_0 = arith.constant 0 : i32
    %2 = arith.cmpi ne, %1, %c0_i32_0 : i32
    scf.if %2 {
      %cst_45 = arith.constant 0.000000e+00 : f32
      %62 = vector.broadcast %cst_45 : f32 to vector<2x128xf32>
      %c0_46 = arith.constant 0 : index
      %c0_47 = arith.constant 0 : index
      %63 = vector.load %arg8[%c0_46, %c0_47] : memref<2x128xf32, #tpu.memory_space<vmem>>, vector<2x128xf32>
      tpu.vector_store %arg8[%c0_46, %c0_47], %62 {strides = array<i32>} : memref<2x128xf32, #tpu.memory_space<vmem>>, vector<2x128xf32>,
      %cst_48 = arith.constant 0.000000e+00 : f32
      %64 = vector.broadcast %cst_48 : f32 to vector<2x128xf32>
      %c0_49 = arith.constant 0 : index
      %c0_50 = arith.constant 0 : index
      %65 = vector.load %arg9[%c0_49, %c0_50] : memref<2x128xf32, #tpu.memory_space<vmem>>, vector<2x128xf32>
      tpu.vector_store %arg9[%c0_49, %c0_50], %64 {strides = array<i32>} : memref<2x128xf32, #tpu.memory_space<vmem>>, vector<2x128xf32>,
      %cst_51 = arith.constant 0.000000e+00 : f32
      %66 = vector.broadcast %cst_51 : f32 to vector<2x128xf32>
      %c0_52 = arith.constant 0 : index
      %c0_53 = arith.constant 0 : index
      %67 = vector.load %arg10[%c0_52, %c0_53] : memref<2x128xf32, #tpu.memory_space<vmem>>, vector<2x128xf32>
      tpu.vector_store %arg10[%c0_52, %c0_53], %66 {strides = array<i32>} : memref<2x128xf32, #tpu.memory_space<vmem>>, vector<2x128xf32>,
    } else {
    }
    %c0 = arith.constant 0 : index
    %c0_1 = arith.constant 0 : index
    %c0_2 = arith.constant 0 : index
    %c0_3 = arith.constant 0 : index
    %3 = vector.load %arg3[%c0, %c0_1, %c0_2, %c0_3] : memref<1x4x2x128xf32, #tpu.memory_space<vmem>>, vector<1x1x2x128xf32>
    %4 = vector.shape_cast %3 : vector<1x1x2x128xf32> to vector<2x128xf32>
    %c0_4 = arith.constant 0 : index
    %c0_5 = arith.constant 0 : index
    %c0_6 = arith.constant 0 : index
    %c0_7 = arith.constant 0 : index
    %5 = vector.load %arg4[%c0_4, %c0_5, %c0_6, %c0_7] : memref<1x4x2x128xf32, #tpu.memory_space<vmem>>, vector<1x1x2x128xf32>
    %6 = vector.shape_cast %5 : vector<1x1x2x128xf32> to vector<2x128xf32>
    %7 = arith.mulf %4, %6 : vector<2x128xf32>
    %8 = arith.mulf %4, %4 : vector<2x128xf32>
    %9 = arith.mulf %6, %6 : vector<2x128xf32>
    %c0_8 = arith.constant 0 : index
    %c1 = arith.constant 1 : index
    %c0_9 = arith.constant 0 : index
    %c0_10 = arith.constant 0 : index
    %10 = vector.load %arg3[%c0_8, %c1, %c0_9, %c0_10] : memref<1x4x2x128xf32, #tpu.memory_space<vmem>>, vector<1x1x2x128xf32>
    %11 = vector.shape_cast %10 : vector<1x1x2x128xf32> to vector<2x128xf32>
    %c0_11 = arith.constant 0 : index
    %c1_12 = arith.constant 1 : index
    %c0_13 = arith.constant 0 : index
    %c0_14 = arith.constant 0 : index
    %12 = vector.load %arg4[%c0_11, %c1_12, %c0_13, %c0_14] : memref<1x4x2x128xf32, #tpu.memory_space<vmem>>, vector<1x1x2x128xf32>
    %13 = vector.shape_cast %12 : vector<1x1x2x128xf32> to vector<2x128xf32>
    %14 = arith.mulf %11, %13 : vector<2x128xf32>
    %15 = arith.addf %7, %14 : vector<2x128xf32>
    %16 = arith.mulf %11, %11 : vector<2x128xf32>
    %17 = arith.addf %8, %16 : vector<2x128xf32>
    %18 = arith.mulf %13, %13 : vector<2x128xf32>
    %19 = arith.addf %9, %18 : vector<2x128xf32>
    %20 = arith.maximumf %6, %13 : vector<2x128xf32>
    %c0_15 = arith.constant 0 : index
    %c2 = arith.constant 2 : index
    %c0_16 = arith.constant 0 : index
    %c0_17 = arith.constant 0 : index
    %21 = vector.load %arg3[%c0_15, %c2, %c0_16, %c0_17] : memref<1x4x2x128xf32, #tpu.memory_space<vmem>>, vector<1x1x2x128xf32>
    %22 = vector.shape_cast %21 : vector<1x1x2x128xf32> to vector<2x128xf32>
    %c0_18 = arith.constant 0 : index
    %c2_19 = arith.constant 2 : index
    %c0_20 = arith.constant 0 : index
    %c0_21 = arith.constant 0 : index
    %23 = vector.load %arg4[%c0_18, %c2_19, %c0_20, %c0_21] : memref<1x4x2x128xf32, #tpu.memory_space<vmem>>, vector<1x1x2x128xf32>
    %24 = vector.shape_cast %23 : vector<1x1x2x128xf32> to vector<2x128xf32>
    %25 = arith.mulf %22, %24 : vector<2x128xf32>
    %26 = arith.addf %15, %25 : vector<2x128xf32>
    %27 = arith.mulf %22, %22 : vector<2x128xf32>
    %28 = arith.addf %17, %27 : vector<2x128xf32>
    %29 = arith.mulf %24, %24 : vector<2x128xf32>
    %30 = arith.addf %19, %29 : vector<2x128xf32>
    %31 = arith.maximumf %20, %24 : vector<2x128xf32>
    %c0_22 = arith.constant 0 : index
    %c3 = arith.constant 3 : index
    %c0_23 = arith.constant 0 : index
    %c0_24 = arith.constant 0 : index
    %32 = vector.load %arg3[%c0_22, %c3, %c0_23, %c0_24] : memref<1x4x2x128xf32, #tpu.memory_space<vmem>>, vector<1x1x2x128xf32>
    %33 = vector.shape_cast %32 : vector<1x1x2x128xf32> to vector<2x128xf32>
    %c0_25 = arith.constant 0 : index
    %c3_26 = arith.constant 3 : index
    %c0_27 = arith.constant 0 : index
    %c0_28 = arith.constant 0 : index
    %34 = vector.load %arg4[%c0_25, %c3_26, %c0_27, %c0_28] : memref<1x4x2x128xf32, #tpu.memory_space<vmem>>, vector<1x1x2x128xf32>
    %35 = vector.shape_cast %34 : vector<1x1x2x128xf32> to vector<2x128xf32>
    %36 = arith.mulf %33, %35 : vector<2x128xf32>
    %37 = arith.addf %26, %36 : vector<2x128xf32>
    %38 = arith.mulf %33, %33 : vector<2x128xf32>
    %39 = arith.addf %28, %38 : vector<2x128xf32>
    %40 = arith.mulf %35, %35 : vector<2x128xf32>
    %41 = arith.addf %30, %40 : vector<2x128xf32>
    %42 = arith.maximumf %31, %35 : vector<2x128xf32>
    %43 = arith.cmpf ogt, %42, %6 : vector<2x128xf32>
    %c0_29 = arith.constant 0 : index
    %c0_30 = arith.constant 0 : index
    %44 = vector.load %arg8[%c0_29, %c0_30] : memref<2x128xf32, #tpu.memory_space<vmem>>, vector<2x128xf32>
    %cst = arith.constant 0.000000e+00 : f32
    %45 = vector.broadcast %cst : f32 to vector<2x128xf32>
    %46 = arith.select %43, %37, %45 : vector<2x128xi1>, vector<2x128xf32>
    %47 = arith.addf %44, %46 : vector<2x128xf32>
    %c0_31 = arith.constant 0 : index
    %c0_32 = arith.constant 0 : index
    %48 = vector.load %arg8[%c0_31, %c0_32] : memref<2x128xf32, #tpu.memory_space<vmem>>, vector<2x128xf32>
    tpu.vector_store %arg8[%c0_31, %c0_32], %47 {strides = array<i32>} : memref<2x128xf32, #tpu.memory_space<vmem>>, vector<2x128xf32>,
    %c0_33 = arith.constant 0 : index
    %c0_34 = arith.constant 0 : index
    %49 = vector.load %arg9[%c0_33, %c0_34] : memref<2x128xf32, #tpu.memory_space<vmem>>, vector<2x128xf32>
    %cst_35 = arith.constant 0.000000e+00 : f32
    %50 = vector.broadcast %cst_35 : f32 to vector<2x128xf32>
    %51 = arith.select %43, %39, %50 : vector<2x128xi1>, vector<2x128xf32>
    %52 = arith.addf %49, %51 : vector<2x128xf32>
    %c0_36 = arith.constant 0 : index
    %c0_37 = arith.constant 0 : index
    %53 = vector.load %arg9[%c0_36, %c0_37] : memref<2x128xf32, #tpu.memory_space<vmem>>, vector<2x128xf32>
    tpu.vector_store %arg9[%c0_36, %c0_37], %52 {strides = array<i32>} : memref<2x128xf32, #tpu.memory_space<vmem>>, vector<2x128xf32>,
    %c0_38 = arith.constant 0 : index
    %c0_39 = arith.constant 0 : index
    %54 = vector.load %arg10[%c0_38, %c0_39] : memref<2x128xf32, #tpu.memory_space<vmem>>, vector<2x128xf32>
    %cst_40 = arith.constant 0.000000e+00 : f32
    %55 = vector.broadcast %cst_40 : f32 to vector<2x128xf32>
    %56 = arith.select %43, %41, %55 : vector<2x128xi1>, vector<2x128xf32>
    %57 = arith.addf %54, %56 : vector<2x128xf32>
    %c0_41 = arith.constant 0 : index
    %c0_42 = arith.constant 0 : index
    %58 = vector.load %arg10[%c0_41, %c0_42] : memref<2x128xf32, #tpu.memory_space<vmem>>, vector<2x128xf32>
    tpu.vector_store %arg10[%c0_41, %c0_42], %57 {strides = array<i32>} : memref<2x128xf32, #tpu.memory_space<vmem>>, vector<2x128xf32>,
    %c0_i32_43 = arith.constant 0 : i32
    %59 = arith.cmpi eq, %arg2, %c0_i32_43 : i32
    %60 = arith.extui %59 : i1 to i32
    %c0_i32_44 = arith.constant 0 : i32
    %61 = arith.cmpi ne, %60, %c0_i32_44 : i32
    scf.if %61 {
      %c0_45 = arith.constant 0 : index
      %c0_46 = arith.constant 0 : index
      %62 = vector.load %arg8[%c0_45, %c0_46] : memref<2x128xf32, #tpu.memory_space<vmem>>, vector<2x128xf32>
      %63 = vector.shape_cast %62 : vector<2x128xf32> to vector<1x2x128xf32>
      %cst_47 = arith.constant dense<0.000000e+00> : vector<1xf32>
      %64 = vector.multi_reduction <add>, %63, %cst_47 [1, 2] : vector<1x2x128xf32> to vector<1xf32>
      %65 = vector.shape_cast %64 : vector<1xf32> to vector<1x1x1xf32>
      %66 = vector.extract %65[0, 0, 0] : f32 from vector<1x1x1xf32>
      %67 = vector.broadcast %66 : f32 to vector<1x1x8x128xf32>
      %c0_48 = arith.constant 0 : index
      %c0_49 = arith.constant 0 : index
      %c0_50 = arith.constant 0 : index
      %c0_51 = arith.constant 0 : index
      %68 = vector.load %arg5[%c0_48, %c0_49, %c0_50, %c0_51] : memref<1x1x8x128xf32, #tpu.memory_space<vmem>>, vector<1x1x8x128xf32>
      tpu.vector_store %arg5[%c0_48, %c0_49, %c0_50, %c0_51], %67 {strides = array<i32>} : memref<1x1x8x128xf32, #tpu.memory_space<vmem>>, vector<1x1x8x128xf32>,
      %c0_52 = arith.constant 0 : index
      %c0_53 = arith.constant 0 : index
      %69 = vector.load %arg9[%c0_52, %c0_53] : memref<2x128xf32, #tpu.memory_space<vmem>>, vector<2x128xf32>
      %70 = vector.shape_cast %69 : vector<2x128xf32> to vector<1x2x128xf32>
      %cst_54 = arith.constant dense<0.000000e+00> : vector<1xf32>
      %71 = vector.multi_reduction <add>, %70, %cst_54 [1, 2] : vector<1x2x128xf32> to vector<1xf32>
      %72 = vector.shape_cast %71 : vector<1xf32> to vector<1x1x1xf32>
      %73 = vector.extract %72[0, 0, 0] : f32 from vector<1x1x1xf32>
      %74 = vector.broadcast %73 : f32 to vector<1x1x8x128xf32>
      %c0_55 = arith.constant 0 : index
      %c0_56 = arith.constant 0 : index
      %c0_57 = arith.constant 0 : index
      %c0_58 = arith.constant 0 : index
      %75 = vector.load %arg6[%c0_55, %c0_56, %c0_57, %c0_58] : memref<1x1x8x128xf32, #tpu.memory_space<vmem>>, vector<1x1x8x128xf32>
      tpu.vector_store %arg6[%c0_55, %c0_56, %c0_57, %c0_58], %74 {strides = array<i32>} : memref<1x1x8x128xf32, #tpu.memory_space<vmem>>, vector<1x1x8x128xf32>,
      %c0_59 = arith.constant 0 : index
      %c0_60 = arith.constant 0 : index
      %76 = vector.load %arg10[%c0_59, %c0_60] : memref<2x128xf32, #tpu.memory_space<vmem>>, vector<2x128xf32>
      %77 = vector.shape_cast %76 : vector<2x128xf32> to vector<1x2x128xf32>
      %cst_61 = arith.constant dense<0.000000e+00> : vector<1xf32>
      %78 = vector.multi_reduction <add>, %77, %cst_61 [1, 2] : vector<1x2x128xf32> to vector<1xf32>
      %79 = vector.shape_cast %78 : vector<1xf32> to vector<1x1x1xf32>
      %80 = vector.extract %79[0, 0, 0] : f32 from vector<1x1x1xf32>
      %81 = vector.broadcast %80 : f32 to vector<1x1x8x128xf32>
      %c0_62 = arith.constant 0 : index
      %c0_63 = arith.constant 0 : index
      %c0_64 = arith.constant 0 : index
      %c0_65 = arith.constant 0 : index
      %82 = vector.load %arg7[%c0_62, %c0_63, %c0_64, %c0_65] : memref<1x1x8x128xf32, #tpu.memory_space<vmem>>, vector<1x1x8x128xf32>
      tpu.vector_store %arg7[%c0_62, %c0_63, %c0_64, %c0_65], %81 {strides = array<i32>} : memref<1x1x8x128xf32, #tpu.memory_space<vmem>>, vector<1x1x8x128xf32>,
    } else {
    }
    return
  }
  func.func @transform_0(%arg0: i32, %arg1: i32, %arg2: i32) -> (i32, i32, i32, i32) {
    %c1_i32 = arith.constant 1 : i32
    %0 = arith.muli %arg1, %c1_i32 : i32
    %1 = arith.addi %0, %arg2 : i32
    %c0_i32 = arith.constant 0 : i32
    %c0_i32_0 = arith.constant 0 : i32
    %c0_i32_1 = arith.constant 0 : i32
    return %arg0, %c0_i32, %1, %c0_i32_0 : i32, i32, i32, i32
  }
  func.func @transform_1(%arg0: i32, %arg1: i32, %arg2: i32) -> (i32, i32, i32, i32) {
    %c1_i32 = arith.constant 1 : i32
    %0 = arith.muli %arg1, %c1_i32 : i32
    %1 = arith.addi %0, %arg2 : i32
    %c0_i32 = arith.constant 0 : i32
    %c0_i32_0 = arith.constant 0 : i32
    %c0_i32_1 = arith.constant 0 : i32
    return %arg0, %c0_i32, %1, %c0_i32_0 : i32, i32, i32, i32
  }
  func.func @transform_2(%arg0: i32, %arg1: i32, %arg2: i32) -> (i32, i32, i32, i32) {
    %c0_i32 = arith.constant 0 : i32
    %c0_i32_0 = arith.constant 0 : i32
    %c0_i32_1 = arith.constant 0 : i32
    return %arg0, %arg1, %c0_i32, %c0_i32_0 : i32, i32, i32, i32
  }
  func.func @transform_3(%arg0: i32, %arg1: i32, %arg2: i32) -> (i32, i32, i32, i32) {
    %c0_i32 = arith.constant 0 : i32
    %c0_i32_0 = arith.constant 0 : i32
    %c0_i32_1 = arith.constant 0 : i32
    return %arg0, %arg1, %c0_i32, %c0_i32_0 : i32, i32, i32, i32
  }
  func.func @transform_4(%arg0: i32, %arg1: i32, %arg2: i32) -> (i32, i32, i32, i32) {
    %c0_i32 = arith.constant 0 : i32
    %c0_i32_0 = arith.constant 0 : i32
    %c0_i32_1 = arith.constant 0 : i32
    return %arg0, %arg1, %c0_i32, %c0_i32_0 : i32, i32, i32, i32
  }
}

</mosaic_0001>

<bundles_post_ra>
// kernel: tpu_custom_call.1
= control target key start
LH: loop header
LB: loop body
LE: loop exit
PB: predicated region body
PF: predicated region fallthrough
CT: control target
= control target key end

     0   :  { %s1207_s0 = inlined_call_operand.hbm [shape: f32[2,4,2,128], index: 0, kind: input, shape index: {}]   ;;  %s1208_s1 = inlined_call_operand.hbm [shape: f32[2,4,2,128], index: 1, kind: input, shape index: {}]   ;;  %s1209_s2 = inlined_call_operand.hbm [shape: f32[2,1,8,128], index: 2, kind: output, shape index: {0}]   ;;  %s1210_s3 = inlined_call_operand.hbm [shape: f32[2,1,8,128], index: 3, kind: output, shape index: {1}]   ;;  %s1211_s4 = inlined_call_operand.hbm [shape: f32[2,1,8,128], index: 4, kind: output, shape index: {2}]  }
   0x1   :  { %1215 = sst [smem:[#allocation20_spill]] %s1207_s0 }
   0x2   :  { %10 = vsyncpa [#allocation6], 0 }
   0x3   :  { %12 = vsyncpa [#allocation6 + $0x1], 0 }
   0x4   :  { %13 = vsyncpa [#allocation9], 0 }
   0x5   :  { %15 = vsyncpa [#allocation9 + $0x1], 0 }
   0x6   :  { %16 = vsyncpa [#allocation7], 0 }
   0x7   :  { %18 = vsyncpa [#allocation7 + $0x1], 0 }
   0x8   :  { %19 = vsyncpa [#allocation12], 0 }
   0x9   :  { %21 = vsyncpa [#allocation12 + $0x1], 0  ;;  %s1005_s15 = smov 0   ;;  %s1007_s16 = smov 0  }
   0xa   :  { %s1009_s17 = smov 0   ;;  %s1011_s18 = smov 0  }
   0xb   :  { %s1013_s19 = smov 0   ;;  %s1015_s20 = smov 0  }
   0xc LB: > { %1216 = sst [smem:[#allocation18_spill]] %s971_s19  ;;  %s1036_s21 = sadd.s32 4294967295, %s975_s20   ;;  %s975_s20 = sphi %s1015_s20, %s27_s20   ;;  %s971_s19 = sphi %s1013_s19, %s1226_s19   ;;  %s967_s18 = sphi %s1011_s18, %s1225_s18   ;;  %s963_s17 = sphi %s1009_s17, %s1229_s17   ;;  %s959_s16 = sphi %s1007_s16, %s1228_s16   ;;  %s955_s15 = sphi %s1005_s15, %s1227_s15  }
   0xd   : > { %s1212_s22 = sadd.s32 4294967294, %s975_s20   ;;  %s46_s23 = sadd.s32 1, %s971_s19 }
   0xe   : > { %s57_s24 = sadd.s32 1, %s963_s17  ;;  %p48_p0 = scmp.ge.s32.totalorder %s46_s23, 2 }
   0xf   : > { %p64_p1 = scmp.ne.s32.totalorder %s963_s17, %s959_s16  ;;  %p65_p2 = scmp.eq.s32.totalorder %s975_s20, 0 }
  0x10   : > { %p70_p3 = scmp.ne.s32.totalorder %s959_s16, %s955_s15  ;;  %s1231_s23 = smov (%p48_p0, %s46_s23), 0 }
  0x11   : > { %1217 = sst [smem:[#allocation19_spill]] %s1231_s23  ;;  %p1048_p4 = por %p65_p2, %p64_p1 }
  0x12   : > { %p71_p5 = scmp.eq.s32.totalorder %s1036_s21, 0  ;;  %s52_s26 = ssub.s32 %s971_s19, %s1231_s23 }
  0x13   : > { %p126_p6 = scmp.eq.s32.totalorder %s1036_s21, 1  ;;  %p55_p7 = scmp.eq.s32.totalorder %s52_s26, 0 }
  0x14   : > { %p1056_p8 = por %p71_p5, %p70_p3  ;;  %p132_p10 = scmp.eq.s32.totalorder %s1212_s22, 1 }
  0x15   : > { %p1060_p9 = por %p126_p6, %p64_p1  ;;  %p654_p12 = scmp.ge.s32.totalorder %s975_s20, 2 }
  0x16   : > { %s1067_s29 = scalar_select %p55_p7, %s963_s17, %s57_s24  }
  0x17   : > { %p1069_p11 = por %p132_p10, %p70_p3  ;;  %p716_p13 = scmp.lt.s32.totalorder %s975_s20, 2 }
  0x18   : > { %s1076_s5 = sand.u32 1, %s963_s17   ;;  %s681_s7 = sshll.u32 %s971_s19, 3 }
  0x19   : > { %s655_s6 = sshll.u32 %s1076_s5, 3  ;;  %s1222_s0 = sld [smem:[#allocation20_spill]] }
  0x1a   : > { %s212_s11 = scalar_lea.vmem [#allocation5], %s655_s6  ;;  %p1085_p0 = pnand %p716_p13, %p1048_p4 }
  0x1b   : > { %s222_s12 = sshll.u32 %s212_s11, 4  ;;  %p661_p1 = scmp.ge.s32.totalorder %s975_s20, 1  ;;  %s223_s12 = int_to_ptr.vmem [resolvable:$true] %s222_s12 }
  0x1c   : > { %s209_s24 = scalar_lea.sflag [#allocation6], %s1076_s5  ;;  %s977_s26 = smov 32  }
  0x1d   : > { %s978_s22 = smov 2   ;;  %p254_p2 = scmp.lt.s32.totalorder %s975_s20, 3 }
  0x1e   : > { %s236_s25 = scalar_lea.vmem [#allocation8], %s655_s6  ;;  %s233_s23 = scalar_lea.sflag [#allocation9], %s1076_s5 }
  0x1f   : > { %s219_s10 = scalar_lea.hbm %s1222_s0, %s681_s7  ;;  %p255_p3 = pnand %p661_p1, %p254_p2 }
  0x20   : > { %s220_s13 = sshll.u32 %s219_s10, 4  ;;  %s243_s10 = scalar_lea.hbm %s1208_s1, %s681_s7  ;;  %s221_s13 = int_to_ptr.hbm [resolvable:$true] %s220_s13 }
  0x21   : > { %702 = dma.hbm_to_vmem [thread:$0]  (!%p1085_p0), %s221_s13, 128, %s223_s12, %s209_s24, %s977_s26, %s977_s26, %s978_s22  }
  0x22   : > { %s244_s11 = sshll.u32 %s243_s10, 4  ;;  %s246_s0 = sshll.u32 %s236_s25, 4  ;;  %s245_s11 = int_to_ptr.hbm [resolvable:$true] %s244_s11  ;;  %s247_s0 = int_to_ptr.vmem [resolvable:$true] %s246_s0 }
  0x23   : > { %705 = dma.hbm_to_vmem [thread:$0]  (!%p1085_p0), %s245_s11, 128, %s247_s0, %s233_s23, %s977_s26, %s977_s26, %s978_s22  }
  0x24   : > { %258 = sbr.rel (%p255_p3) target bundleno = 281 (0x119), region = 28  ;;  %s1101_s19 = sand.u32 (!%p255_p3), 1, %s959_s16  }
  0x25   : > { %s1104_s12 = sshll.u32 (!%p255_p3), %s1101_s19, 3  ;;  %s261_s7 = scalar_lea.sflag (!%p255_p3), [#allocation6], %s1101_s19 }
  0x26   : > { %s264_s13 = scalar_lea.vmem (!%p255_p3), [#allocation5], %s1104_s12 }
  0x29   : > { %938 = dma.done.wait (%p1056_p8), %s261_s7, 128  }
  0x2a   : > { %940 = vsyncadd (%p1056_p8), %s261_s7, 4294967168  ;;  %s271_s0 = scalar_lea.sflag [#allocation9], %s1101_s19  ;;  %s274_s22 = scalar_lea.vmem [#allocation8], %s1104_s12 }
  0x2b   : > { %942 = dma.done.wait (%p1056_p8), %s271_s0, 128  }
  0x2c   : > { %944 = vsyncadd (%p1056_p8), %s271_s0, 4294967168  ;;  %v979_v0 = vmov 0.0   ;;  %v324_v1 = vld [vmem:[%s264_s13] sm:$0x3]  ;;  %v325_v2 = vld [vmem:[%s274_s22] sm:$0x3] }
  0x2d   : > { %321 = vst [vmem:[#allocation2] sm:$0x3] %v979_v0  ;;  %v667_v3 = vld [vmem:[%s264_s13 + $0x2] sm:$0x3]  ;;  %v326_v4 = vmul.f32 %v325_v2, %v324_v1  ;;  %v668_v5 = vld [vmem:[%s274_s22 + $0x2] sm:$0x3]  ;;  %v328_v8 = vmul.f32 %v325_v2, %v325_v2  ;;  %v327_v9 = vmul.f32 %v324_v1, %v324_v1 }
  0x2e   : > { %322 = vst [vmem:[#allocation3] sm:$0x3] %v979_v0  ;;  %v669_v6 = vld [vmem:[%s264_s13 + $0x4] sm:$0x3]  ;;  %v670_v7 = vld [vmem:[%s274_s22 + $0x4] sm:$0x3]  ;;  %v335_v10 = vmul.f32 %v667_v3, %v667_v3  ;;  %v333_v11 = vmul.f32 %v668_v5, %v667_v3  ;;  %v339_v12 = vmax.f32 %v325_v2, %v668_v5  ;;  %v337_v16 = vmul.f32 %v668_v5, %v668_v5 }
  0x2f   : > { %323 = vst [vmem:[#allocation4] sm:$0x3] %v979_v0  ;;  %v344_v13 = vmul.f32 %v670_v7, %v669_v6  ;;  %v671_v14 = vld [vmem:[%s264_s13 + $0x6] sm:$0x3]  ;;  %v672_v15 = vld [vmem:[%s274_s22 + $0x6] sm:$0x3]  ;;  %v348_v18 = vmul.f32 %v670_v7, %v670_v7  ;;  %v346_v24 = vmul.f32 %v669_v6, %v669_v6 }
  0x30   : > { %v355_v17 = vmul.f32 %v672_v15, %v671_v14  ;;  %v359_v19 = vmul.f32 %v672_v15, %v672_v15  ;;  %v336_v20 = vadd.f32 %v335_v10, %v327_v9  ;;  %v334_v21 = vadd.f32 %v333_v11, %v326_v4  ;;  %s1119_s23 = sshll.u32 %s967_s18, 3  ;;  %s300_s14 = scalar_lea.vmem [#allocation10], %s1104_s12 }
  0x31   : > { %v350_v22 = vmax.f32 %v339_v12, %v670_v7  ;;  %v338_v23 = vadd.f32 %v337_v16, %v328_v8  ;;  %v357_v25 = vmul.f32 %v671_v14, %v671_v14  ;;  %vm379_vm1 = vcmask 1041408   ;;  %s440_s6 = scalar_lea.hbm %s1209_s2, %s1119_s23  ;;  %s442_s24 = sshll.u32 %s300_s14, 4  ;;  %s443_s24 = int_to_ptr.vmem [resolvable:$true] %s442_s24 }
  0x32   : > { %v345_v26 = vadd.f32 %v344_v13, %v334_v21  ;;  %v347_v29 = vadd.f32 %v346_v24, %v336_v20  ;;  %s444_s26 = sshll.u32 %s440_s6, 4  ;;  %s455_s18 = scalar_lea.hbm %s1210_s3, %s1119_s23  ;;  %s445_s26 = int_to_ptr.hbm [resolvable:$true] %s444_s26 }
  0x33   : > { %v361_v27 = vmax.f32 %v350_v22, %v672_v15  ;;  %v349_v28 = vadd.f32 %v348_v18, %v338_v23  ;;  %s423_s11 = sand.u32 1, %s1036_s21   ;;  %s470_s13 = scalar_lea.hbm %s1211_s4, %s1119_s23 }
  0x34   : > { %v356_v30 = vadd.f32 %v355_v17, %v345_v26  ;;  %v363_v31 = vld [vmem:[#allocation2] sm:$0x3]  ;;  %v358_v34 = vadd.f32 %v357_v25, %v347_v29  ;;  %s419_s0 = scalar_lea.sflag [#allocation7], %s1101_s19  ;;  %s843_s22 = sshra.s32 %s445_s26, 4  ;;  %s844_s22 = int_to_ptr.hbm [resolvable:$true] %s843_s22 }
  0x35   : > { %vm362_vm0 = vcmp.gt.f32.partialorder %v361_v27, %v325_v2  ;;  %v360_v32 = vadd.f32 %v359_v19, %v349_v28  ;;  %v367_v35 = vld [vmem:[#allocation3] sm:$0x3]  ;;  %s845_s27 = scalar_lea.hbm %s844_s22, 8  ;;  %p850_p7 = scmp.lt.s32.totalorder %s844_s22, %s1209_s2 }
  0x36   : > { %v371_v33 = vld [vmem:[#allocation4] sm:$0x3]  ;;  %v364_v36 = vsel %vm362_vm0, %v356_v30, 0.0  ;;  %v368_v38 = vsel %vm362_vm0, %v358_v34, 0.0  ;;  %p846_p4 = scmp.ne.s32.totalorder %s844_s22, %s845_s27 }
  0x37   : > { %v372_v37 = vsel %vm362_vm0, %v360_v32, 0.0  ;;  %v365_v39 = vadd.f32 %v364_v36, %v363_v31  ;;  %v369_v41 = vadd.f32 %v368_v38, %v367_v35 }
  0x38   : > { %v373_v40 = vadd.f32 %v372_v37, %v371_v33  ;;  %p847_p5 = pnand %p846_p4, %p1060_p9 }
  0x39   : > { %366 = vst [vmem:[#allocation2] sm:$0x3] %v365_v39 }
  0x3a   : > { %374 = vst [vmem:[#allocation4] sm:$0x3] %v373_v40  ;;  %p848_p6 = pneg %p847_p5 }
  0x3b   : > { %370 = vst [vmem:[#allocation3] sm:$0x3] %v369_v41 }
  0x40   : > { %v378_v42 = vld [vmem:[#allocation2] sm:$0x3] }
  0x41   : > { %v380_v43 = vsel %vm379_vm1, %v378_v42, 0.0  ;;  %v405_v44 = vld [vmem:[#allocation4] sm:$0x3] }
  0x42   : > { %381 = vadd.xlane.f32.xlu0 %v380_v43  ;;  %v406_v45 = vsel %vm379_vm1, %v405_v44, 0.0  ;;  %v392_v46 = vld [vmem:[#allocation3] sm:$0x3] }
  0x43   : > { %407 = vadd.xlane.f32.xlu1 %v406_v45  ;;  %v393_v47 = vsel %vm379_vm1, %v392_v46, 0.0 }
  0x4a   : > { %394 = vadd.xlane.f32.xlu0 %v393_v47 }
  0xb5   : > { %v382_v48 = vpop.xlane.xlu0 %381 }
  0xb6   : > { %v383_v49 = vrot.slane %v382_v48, 4  ;;  %v408_v50 = vpop.xlane.xlu1 %407 }
  0xb7   : > { %v409_v51 = vrot.slane %v408_v50, 4 }
  0xb8   : > { %v384_v52 = vadd.f32 %v383_v49, %v382_v48 }
  0xb9   : > { %v410_v53 = vadd.f32 %v409_v51, %v408_v50 }
  0xba   : > { %v385_v54 = vrot.slane %v384_v52, 2 }
  0xbb   : > { %v411_v56 = vrot.slane %v410_v53, 2 }
  0xbc   : > { %v386_v55 = vadd.f32 %v385_v54, %v384_v52 }
  0xbd   : > { %v395_v57 = vpop.xlane.xlu0 %394  ;;  %v412_v62 = vadd.f32 %v411_v56, %v410_v53 }
  0xbe   : > { %v396_v58 = vrot.slane %v395_v57, 4  ;;  %v387_v59 = vrot.slane %v386_v55, 1 }
  0xbf   : > { %v413_v1 = vrot.slane %v412_v62, 1 }
  0xc0   : > { %v397_v60 = vadd.f32 %v396_v58, %v395_v57  ;;  %v388_v61 = vadd.f32 %v387_v59, %v386_v55 }
  0xc1   : > { %v414_v4 = vadd.f32 %v413_v1, %v412_v62 }
  0xc2   : > { %v398_v63 = vrot.slane %v397_v60, 2  ;;  %683 = vpush %v388_v61 }
  0xc4   : > { %v399_v0 = vadd.f32 %v398_v63, %v397_v60 }
  0xc6   : > { %v400_v2 = vrot.slane %v399_v0, 1 }
  0xc8   : > { %v401_v3 = vadd.f32 %v400_v2, %v399_v0 }
  0xca   : > { %685 = vpush %v401_v3 }
  0xcb   : > { %687 = vpush %v414_v4 }
  0xf3   : > { %s684_s8 = spop %683 }
  0xf4   : > { %v390_v5 = vstv %s684_s8  ;;  %s849_s8 = scalar_lea.hbm %s1209_s2, 16 }
  0xf5   : > { %391 = vst [vmem:[%s300_s14] sm:$0xff] %v390_v5  ;;  %p851_p8 = scmp.lt.s32.totalorder %s849_s8, %s845_s27 }
  0xf7   : > { %p852_p10 = por %p851_p8, %p850_p7 }
  0xf9   : > { %p853_p13 = pnand %p852_p10, %p848_p6 }
  0xfb   : > { %856 = shalt.err (!%p853_p13)
}
  0xfc   : > { %693 = dma.vmem_to_hbm [thread:$0]  (%p1060_p9), %s443_s24, 128, %s445_s26, %s419_s0  }
  0xfd   : > { %s314_s19 = scalar_lea.vmem [#allocation13], %s1104_s12  ;;  %s307_s14 = scalar_lea.vmem [#allocation11], %s1104_s12 }
  0xfe   : > { %s1147_s23 = sshll.u32 %s314_s19, 4  ;;  %s457_s25 = sshll.u32 %s307_s14, 4  ;;  %s473_s23 = int_to_ptr.vmem [resolvable:$true] %s1147_s23  ;;  %s458_s25 = int_to_ptr.vmem [resolvable:$true] %s457_s25 }
  0xff   : > { %s459_s7 = sshll.u32 %s455_s18, 4  ;;  %s1150_s5 = sshll.u32 %s470_s13, 4  ;;  %s460_s7 = int_to_ptr.hbm [resolvable:$true] %s459_s7  ;;  %s475_s5 = int_to_ptr.hbm [resolvable:$true] %s1150_s5 }
 0x100   : > { %s686_s22 = spop %685  ;;  %s424_s24 = scalar_lea.sflag [#allocation12], %s423_s11 }
 0x101   : > { %v403_v6 = vstv %s686_s22  ;;  %s688_s27 = spop %687  ;;  %s871_s26 = sshra.s32 %s460_s7, 4  ;;  %s872_s26 = int_to_ptr.hbm [resolvable:$true] %s871_s26 }
 0x102   : > { %404 = vst [vmem:[%s307_s14] sm:$0xff] %v403_v6  ;;  %v416_v7 = vstv %s688_s27  ;;  %s873_s12 = scalar_lea.hbm %s872_s26, 8  ;;  %s877_s0 = scalar_lea.hbm %s1210_s3, 16 }
 0x103   : > { %417 = vst [vmem:[%s314_s19] sm:$0xff] %v416_v7  ;;  %p874_p0 = scmp.ne.s32.totalorder %s872_s26, %s873_s12  ;;  %p878_p3 = scmp.lt.s32.totalorder %s872_s26, %s1210_s3 }
 0x104   : > { %p879_p4 = scmp.lt.s32.totalorder %s877_s0, %s873_s12 }
 0x105   : > { %p875_p1 = pnand %p874_p0, %p1060_p9 }
 0x106   : > { %p880_p5 = por %p879_p4, %p878_p3 }
 0x107   : > { %p876_p2 = pneg %p875_p1 }
 0x109   : > { %p881_p6 = pnand %p880_p5, %p876_p2 }
 0x10b   : > { %884 = shalt.err (!%p881_p6)
}
 0x10c   : > { %694 = dma.vmem_to_hbm [thread:$0]  (%p1060_p9), %s458_s25, 128, %s460_s7, %s424_s24  }
 0x10d   : > { %s899_s21 = sshra.s32 %s475_s5, 4  ;;  %s905_s19 = scalar_lea.hbm %s1211_s4, 16  ;;  %s900_s21 = int_to_ptr.hbm [resolvable:$true] %s899_s21 }
 0x10e   : > { %s901_s11 = scalar_lea.hbm %s900_s21, 8  ;;  %p906_p13 = scmp.lt.s32.totalorder %s900_s21, %s1211_s4 }
 0x10f   : > { %p902_p7 = scmp.ne.s32.totalorder %s900_s21, %s901_s11  ;;  %p907_p0 = scmp.lt.s32.totalorder %s905_s19, %s901_s11 }
 0x111   : > { %p903_p8 = pnand %p902_p7, %p1060_p9  ;;  %p908_p1 = por %p907_p0, %p906_p13 }
 0x113   : > { %p904_p10 = pneg %p903_p8 }
 0x115   : > { %p909_p2 = pnand %p908_p1, %p904_p10 }
 0x117   : > { %912 = shalt.err (!%p909_p2)
}
 0x118   : > { %695 = dma.vmem_to_hbm [thread:$0]  (%p1060_p9), %s473_s23, 128, %s475_s5, %s424_s24  }
 0x119 PF: > { %s486_s25 = sand.u32 1, %s955_s15   ;;  %p707_p3 = pnand %p654_p12, %p1069_p11 }
 0x11a   : > { %s487_s7 = scalar_lea.sflag [#allocation7], %s486_s25 }
 0x11b   : > { %p708_p4 = pneg %p707_p3 }
 0x11d   : > { %946 = dma.done.wait (%p708_p4), %s487_s7, 128  }
 0x11e   : > { %948 = vsyncadd (%p708_p4), %s487_s7, 4294967168  ;;  %s1224_s27 = sadd.s32 4294967294, %s975_s20  }
 0x11f   : > { %s496_s28 = sand.u32 1, %s1224_s27  }
 0x120   : > { %s497_s26 = scalar_lea.sflag [#allocation12], %s496_s28 }
 0x121   : > { %950 = dma.done.wait (%p708_p4), %s497_s26, 256  }
 0x122   : > { %952 = vsyncadd (%p708_p4), %s497_s26, 4294967040  ;;  %s27_s20 = sadd.s32 1, %s975_s20   ;;  %s1225_s18 = sld [smem:[#allocation18_spill]] }
 0x123   : > { %p24_p9 = scmp.ge.s32.totalorder %s27_s20, 4   ;;  %s1226_s19 = sld [smem:[#allocation19_spill]] }
 0x124   : > { %s1227_s15 = smov %s959_s16  ;;  %s1228_s16 = smov %s963_s17 }
 0x125   : > { %s1229_s17 = smov %s1067_s29  ;;  %26 = sbr.rel (!%p24_p9) target bundleno = 12 (0xc), region = 132 }
 0x12a   :  { %513 = vsyncpa [#allocation6], 1 }
 0x12b   :  { %515 = vsyncpa [#allocation6 + $0x1], 1 }
 0x12c   :  { %516 = vsyncpa [#allocation9], 1 }
 0x12d   :  { %518 = vsyncpa [#allocation9 + $0x1], 1 }
 0x12e   :  { %519 = vsyncpa [#allocation7], 1 }
 0x12f   :  { %521 = vsyncpa [#allocation7 + $0x1], 1 }
 0x130   :  { %522 = vsyncpa [#allocation12], 1 }
 0x131   :  { %524 = vsyncpa [#allocation12 + $0x1], 1 }

</bundles_post_ra>
